<compile_context>
chip_gen: v6e
topology: v6e:2x2x1
jax: 0.10.0
libtpu: 0.0.40
codegen_flags: <defaults>
</compile_context>

<pallas_src>
import math

import jax
import jax.numpy as jnp
from jax.experimental import pallas as pl
from jax.experimental.pallas import tpu as pltpu


def _round_up(x, m):
    return (x + m - 1) // m * m


def _cdiv(a, b):
    return -(-a // b)


# --------------------------------------------------------------------------
# hardware-aware sizing
# --------------------------------------------------------------------------

def _vmem_budget_bytes():
    """Scoped-VMEM budget: ~3/4 of physical VMEM (96 MiB on 128-MiB v5e/v6e,
    48 MiB on 64-MiB v7x), with a conservative fallback when the query fails."""
    phys = None
    try:
        phys = int(pltpu.get_tpu_info().vmem_capacity_bytes)
    except Exception:
        phys = None
    if phys is None:
        try:
            kind = jax.devices()[0].device_kind.lower()
        except Exception:
            kind = ""
        if any(s in kind for s in ("v5 lite", "v5e", "v5litepod", "v6", "trillium")):
            phys = 128 * 1024 * 1024
        else:
            phys = 64 * 1024 * 1024            # conservative: v7x & unknown parts
    phys = max(32 * 1024 * 1024, min(phys, 128 * 1024 * 1024))
    return max(16 * 1024 * 1024, min(phys * 3 // 4, phys - 16 * 1024 * 1024))


def _pick_tiling(n, channel_dims, budget, tile_n=None):
    """Pick (tile, num_blocks, n_pad, cores): double-buffered x/out tiles plus
    ~3 live f32 (c_max, tile) intermediates must fit half the scoped budget;
    padding waste is bounded by num_blocks*128 columns; num_blocks divides
    evenly over the parallel core axis."""
    c0, c_last = channel_dims[0], channel_dims[-1]
    c_max = max(channel_dims)
    bytes_per_col = 4 * (2 * c0 + 2 * c_last + 3 * c_max)
    cap = (budget // 2) // bytes_per_col       # 50% headroom for compiler temps
    cap = max(512, min(cap, 64 * 1024))
    if tile_n is not None:
        cap = min(cap, max(128, int(tile_n)))
    cap = cap // 128 * 128

    n128 = _round_up(n, 128)
    cores = 2 if n128 >= 256 else 1            # megacore split (v7x); no-op on 1-TC chips
    num_blocks = _round_up(max(_cdiv(n128, cap), cores), cores)
    tile = _round_up(_cdiv(n128, num_blocks), 128)
    n_pad = num_blocks * tile
    return tile, num_blocks, n_pad, cores


# --------------------------------------------------------------------------
# kernels
# --------------------------------------------------------------------------

def _apply_layers(h, w_refs, sh_refs, acts, n_layers):
    """Layers 0..n_layers-1 (scale-folded 1x1-conv matmul + BN shift + act) on a
    channels-first (C, TILE_N) tile; everything stays f32 in VMEM/vregs."""
    for j in range(n_layers):
        y = jnp.dot(w_refs[j][...], h, preferred_element_type=jnp.float32)
        y = y + sh_refs[j][...]                 # (C_j, 1) lane-broadcast shift
        if acts[j] == "relu":
            y = jnp.maximum(y, 0.0)
        h = y
    return h


def _make_stats_kernel(k, acts):
    """Pass k: recompute layers 0..k-1 (folded), do the raw layer-k matmul and
    accumulate its per-channel sum / sum-of-squares over this core's tiles."""
    def kernel(*refs):
        x_ref = refs[0]
        w_refs = refs[1:1 + k]                  # scale-folded weights, layers 0..k-1
        wk_ref = refs[1 + k]                    # raw weight, layer k
        sh_refs = refs[2 + k:2 + 2 * k]         # shifts, layers 0..k-1
        sum_ref, sq_ref = refs[2 + 2 * k], refs[3 + 2 * k]

        h = _apply_layers(x_ref[...].astype(jnp.float32), w_refs, sh_refs, acts, k)
        y = jnp.dot(wk_ref[...], h, preferred_element_type=jnp.float32)   # (C_k, TILE)

        @pl.when(pl.program_id(1) == 0)
        def _():
            sum_ref[...] = jnp.zeros_like(sum_ref)
            sq_ref[...] = jnp.zeros_like(sq_ref)

        # Per-tile reduction (128-lane tree inside a big tile), so the running
        # f32 accumulator only ever sees num_blocks partial sums.
        sum_ref[...] += jnp.sum(y, axis=1, keepdims=True)
        sq_ref[...] += jnp.sum(y * y, axis=1, keepdims=True)

    return kernel


def _make_final_kernel(n_layers, acts):
    def kernel(*refs):
        x_ref = refs[0]
        w_refs = refs[1:1 + n_layers]
        sh_refs = refs[1 + n_layers:1 + 2 * n_layers]
        o_ref = refs[-1]
        h = _apply_layers(x_ref[...].astype(jnp.float32), w_refs, sh_refs, acts, n_layers)
        o_ref[...] = h.astype(o_ref.dtype)
    return kernel


# --------------------------------------------------------------------------
# pass wrappers
# --------------------------------------------------------------------------

def _stats_pass(x_cn, w_eff, shifts, w_raw_k, acts, k, tile, num_blocks, cores,
                vmem_limit):
    c0 = x_cn.shape[0]
    c_k = w_raw_k.shape[0]
    tiles_per_core = num_blocks // cores

    def param_spec(arr):
        return pl.BlockSpec(arr.shape, lambda p, t: (0, 0))

    in_specs = [pl.BlockSpec((c0, tile),
                             lambda p, t, T=tiles_per_core: (0, p * T + t))]
    in_specs += [param_spec(w) for w in w_eff]
    in_specs += [param_spec(w_raw_k)]
    in_specs += [param_spec(s) for s in shifts]

    acc_spec = pl.BlockSpec((None, c_k, 1), lambda p, t: (p, 0, 0))
    out_shape = (jax.ShapeDtypeStruct((cores, c_k, 1), jnp.float32),
                 jax.ShapeDtypeStruct((cores, c_k, 1), jnp.float32))

    s, q = pl.pallas_call(
        _make_stats_kernel(k, acts),
        grid=(cores, tiles_per_core),
        in_specs=in_specs,
        out_specs=(acc_spec, acc_spec),
        out_shape=out_shape,
        compiler_params=pltpu.CompilerParams(
            dimension_semantics=("parallel", "arbitrary"),
            vmem_limit_bytes=int(vmem_limit)),
    )(x_cn, *w_eff, w_raw_k, *shifts)

    # combine per-core partial accumulators
    return jnp.sum(s, axis=0)[:, 0], jnp.sum(q, axis=0)[:, 0]


def _final_pass(x_cn, w_eff, shifts, acts, tile, num_blocks, vmem_limit, out_dtype):
    c0 = x_cn.shape[0]
    n_layers = len(w_eff)
    c_out = w_eff[-1].shape[0]

    def param_spec(arr):
        return pl.BlockSpec(arr.shape, lambda t: (0, 0))

    in_specs = [pl.BlockSpec((c0, tile), lambda t: (0, t))]
    in_specs += [param_spec(w) for w in w_eff]
    in_specs += [param_spec(s) for s in shifts]

    return pl.pallas_call(
        _make_final_kernel(n_layers, acts),
        grid=(num_blocks,),
        in_specs=in_specs,
        out_specs=pl.BlockSpec((c_out, tile), lambda t: (0, t)),
        out_shape=jax.ShapeDtypeStruct((c_out, num_blocks * tile), out_dtype),
        compiler_params=pltpu.CompilerParams(
            dimension_semantics=("parallel",),      # independent tiles -> megacore split
            vmem_limit_bytes=int(vmem_limit)),
    )(x_cn, *w_eff, *shifts)


# --------------------------------------------------------------------------
# public forward
# --------------------------------------------------------------------------

def fc_forward(x, params, activations, *, eps=1e-5, tile_n=None):
    """x: (B, W, H, C_in) channels-last -> (B, W, H, units[-1]).

    Matches the PyTorch FC module forward in training mode (batch-statistics BN).
    The conv bias is dropped: training-mode BN subtracts the batch mean, which
    cancels any per-channel bias exactly in the forward output.
    """
    b, w_dim, h_dim, c0 = x.shape
    n = b * w_dim * h_dim
    num_layers = len(params)
    w_raw = [p["w_t"] for p in params]                 # (C_out, C_in) per layer, f32
    channel_dims = [c0] + [w.shape[0] for w in w_raw]

    budget = _vmem_budget_bytes()
    tile, num_blocks, n_pad, cores = _pick_tiling(n, channel_dims, budget, tile_n)

    # Layout plumbing: (B,W,H,C) -> (N,C) -> (C,N) so the big N axis is the lane
    # axis.  XLA fuses transpose+pad into one materialization.
    # TODO(synk): accepting/returning a channels-first (C, N) layout at the API
    # boundary would remove both wrapper transposes (one extra HBM pass each).
    x_cn = jnp.transpose(x.reshape(n, c0))
    if n_pad > n:
        x_cn = jnp.pad(x_cn, ((0, 0), (0, n_pad - n)))
    pad_cols = float(n_pad - n)

    # Padded columns of x are exact zeros; after layers 0..k-1 they hold a fixed
    # per-channel constant h_pad.  Track it in the wrapper and subtract its
    # analytically known contribution from the accumulated stats (no in-kernel
    # masking needed).
    w_eff, shifts = [], []
    h_pad = jnp.zeros((c0,), jnp.float32)

    for k in range(num_layers):
        s, q = _stats_pass(x_cn, w_eff, shifts, w_raw[k], activations, k,
                           tile, num_blocks, cores, budget)
        y_pad = jnp.dot(w_raw[k], h_pad)               # layer-k pre-BN value on pad cols
        mean = (s - pad_cols * y_pad) / n
        ex2 = (q - pad_cols * y_pad * y_pad) / n
        var = jnp.maximum(ex2 - mean * mean, 0.0)      # biased batch variance
        scale = params[k]["gamma"] * jax.lax.rsqrt(var + eps)
        shift = params[k]["beta"] - mean * scale
        w_eff.append((scale[:, None] * w_raw[k]).astype(jnp.float32))   # fold BN scale
        shifts.append(shift[:, None].astype(jnp.float32))
        h_pad = jnp.dot(w_eff[k], h_pad) + shift
        if activations[k] == "relu":
            h_pad = jnp.maximum(h_pad, 0.0)

    out_cn = _final_pass(x_cn, w_eff, shifts, activations, tile, num_blocks,
                         budget, x.dtype)
    return jnp.transpose(out_cn[:, :n]).reshape(b, w_dim, h_dim, -1)
    # TODO(synk): BatchNorm running-mean/var buffer updates (training-time side
    # effect, momentum=bn_decay) are not reproduced; they do not affect this output.


# --------------------------------------------------------------------------
# params + pure-JAX reference
# --------------------------------------------------------------------------

def init_fc_params(key, input_dims, units):
    params = []
    for c_in, c_out in zip(input_dims, units):
        key, sub = jax.random.split(key)
        # xavier_uniform on a (c_out, c_in, 1, 1) conv weight
        bound = math.sqrt(6.0 / (c_in + c_out))
        params.append(dict(
            w_t=jax.random.uniform(sub, (c_out, c_in), jnp.float32, -bound, bound),
            gamma=jnp.ones((c_out,), jnp.float32),    # BN weight
            beta=jnp.zeros((c_out,), jnp.float32),    # BN bias
        ))
    return params


def fc_reference(x, params, activations, eps=1e-5):
    """Pure-JAX reference matching the PyTorch module (training-mode BN)."""
    b, w_dim, h_dim, c0 = x.shape
    y = x.reshape(b * w_dim * h_dim, c0)
    for p, act in zip(params, activations):
        y = y @ p["w_t"].T                        # 1x1 conv (bias cancels under BN)
        mean = jnp.mean(y, axis=0)
        var = jnp.mean((y - mean) ** 2, axis=0)   # biased variance
        y = (y - mean) * jax.lax.rsqrt(var + eps) * p["gamma"] + p["beta"]
        if act == "relu":
            y = jnp.maximum(y, 0.0)
    return y.reshape(b, w_dim, h_dim, -1)


if __name__ == "__main__":
    key = jax.random.PRNGKey(0)
    kx, kp = jax.random.split(key)

    # FC(input_dims=[4, 32], units=[32, 16], activations=[F.relu, None], bn_decay=0.1)
    B, W, H = 2, 16, 18                 # N = 576: multi-block grid + padded tail columns
    input_dims = (4, 32)
    units = (32, 16)
    activations = ("relu", None)

    x = jax.random.normal(kx, (B, W, H, input_dims[0]), jnp.float32)
    params = init_fc_params(kp, input_dims, units)
    ref = fc_reference(x, params, activations)

    fwd = jax.jit(fc_forward, static_argnames=("activations", "tile_n"))

    # 1) small forced tile: exercises the cross-tile stats-accumulation path
    out_small = jax.block_until_ready(fwd(x, params, activations=activations, tile_n=128))
    # 2) default auto-sized tile: the performance configuration
    out_auto = jax.block_until_ready(fwd(x, params, activations=activations))

    for out in (out_small, out_auto):
        assert out.shape == (B, W, H, units[-1]), out.shape
        assert bool(jnp.all(jnp.isfinite(out)))
        err = float(jnp.max(jnp.abs(out - ref)))
        assert bool(jnp.allclose(out, ref, atol=5e-3, rtol=5e-3)), err
    print("KERNEL_OK")
</pallas_src>

<mosaic_0001>
module attributes {stable_mosaic.version = 11 : i64} {
  func.func @kernel(%arg0: i32, %arg1: i32, %arg2: memref<4x128xf32, #tpu.memory_space<vmem>>, %arg3: memref<32x4xf32, #tpu.memory_space<vmem>>, %arg4: memref<16x32xf32, #tpu.memory_space<vmem>>, %arg5: memref<32x1xf32, #tpu.memory_space<vmem>>, %arg6: memref<1x16x1xf32, #tpu.memory_space<vmem>>, %arg7: memref<1x16x1xf32, #tpu.memory_space<vmem>>) attributes {dimension_semantics = [#tpu.dimension_semantics<parallel>, #tpu.dimension_semantics<arbitrary>], iteration_bounds = array<i64: 2, 3>, scalar_prefetch = 0 : i64, scratch_operands = 0 : i64, tpu.core_type = #tpu.core_type<tc>, window_params = [{transform_indices = @transform_0, window_bounds = array<i64: 4, 128>}, {pipeline_mode = #tpu.pipeline_mode<synchronous>, transform_indices = @transform_1, window_bounds = array<i64: 32, 4>}, {pipeline_mode = #tpu.pipeline_mode<synchronous>, transform_indices = @transform_2, window_bounds = array<i64: 16, 32>}, {pipeline_mode = #tpu.pipeline_mode<synchronous>, transform_indices = @transform_3, window_bounds = array<i64: 32, 1>}, {transform_indices = @transform_4, window_bounds = array<i64: 1, 16, 1>}, {transform_indices = @transform_5, window_bounds = array<i64: 1, 16, 1>}]} {
    %c0 = arith.constant 0 : index
    %c0_0 = arith.constant 0 : index
    %0 = vector.load %arg2[%c0, %c0_0] : memref<4x128xf32, #tpu.memory_space<vmem>>, vector<4x128xf32>
    %c0_1 = arith.constant 0 : index
    %c0_2 = arith.constant 0 : index
    %1 = vector.load %arg3[%c0_1, %c0_2] : memref<32x4xf32, #tpu.memory_space<vmem>>, vector<32x4xf32>
    %cst = arith.constant dense<0.000000e+00> : vector<32x128xf32>
    %2 = tpu.matmul %1, %0, %cst {dimension_numbers = #tpu.dot_dimension_numbers<[1], [0], [0], [1], [0, 0, 1, 1], [], []>} : vector<32x4xf32>, vector<4x128xf32>, vector<32x128xf32> -> vector<32x128xf32>
    %c0_3 = arith.constant 0 : index
    %c0_4 = arith.constant 0 : index
    %3 = vector.load %arg5[%c0_3, %c0_4] : memref<32x1xf32, #tpu.memory_space<vmem>>, vector<32x1xf32>
    %4 = vector.broadcast %3 : vector<32x1xf32> to vector<32x128xf32>
    %5 = arith.addf %2, %4 : vector<32x128xf32>
    %cst_5 = arith.constant 0.000000e+00 : f32
    %6 = vector.broadcast %cst_5 : f32 to vector<32x128xf32>
    %7 = arith.maximumf %5, %6 : vector<32x128xf32>
    %c0_6 = arith.constant 0 : index
    %c0_7 = arith.constant 0 : index
    %8 = vector.load %arg4[%c0_6, %c0_7] : memref<16x32xf32, #tpu.memory_space<vmem>>, vector<16x32xf32>
    %cst_8 = arith.constant dense<0.000000e+00> : vector<16x128xf32>
    %9 = tpu.matmul %8, %7, %cst_8 {dimension_numbers = #tpu.dot_dimension_numbers<[1], [0], [0], [1], [0, 0, 1, 1], [], []>} : vector<16x32xf32>, vector<32x128xf32>, vector<16x128xf32> -> vector<16x128xf32>
    %c0_i32 = arith.constant 0 : i32
    %10 = arith.cmpi eq, %arg1, %c0_i32 : i32
    %11 = arith.extui %10 : i1 to i32
    %c0_i32_9 = arith.constant 0 : i32
    %12 = arith.cmpi ne, %11, %c0_i32_9 : i32
    scf.if %12 {
      %cst_24 = arith.constant 0.000000e+00 : f32
      %30 = vector.broadcast %cst_24 : f32 to vector<16x1xf32>
      %c0_25 = arith.constant 0 : index
      %c0_26 = arith.constant 0 : index
      %c0_27 = arith.constant 0 : index
      %31 = vector.load %arg6[%c0_25, %c0_26, %c0_27] : memref<1x16x1xf32, #tpu.memory_space<vmem>>, vector<1x16x1xf32>
      %32 = vector.shape_cast %31 : vector<1x16x1xf32> to vector<16x1xf32>
      %33 = vector.shape_cast %30 : vector<16x1xf32> to vector<1x16x1xf32>
      tpu.vector_store %arg6[%c0_25, %c0_26, %c0_27], %33 {strides = array<i32>} : memref<1x16x1xf32, #tpu.memory_space<vmem>>, vector<1x16x1xf32>,
      %cst_28 = arith.constant 0.000000e+00 : f32
      %34 = vector.broadcast %cst_28 : f32 to vector<16x1xf32>
      %c0_29 = arith.constant 0 : index
      %c0_30 = arith.constant 0 : index
      %c0_31 = arith.constant 0 : index
      %35 = vector.load %arg7[%c0_29, %c0_30, %c0_31] : memref<1x16x1xf32, #tpu.memory_space<vmem>>, vector<1x16x1xf32>
      %36 = vector.shape_cast %35 : vector<1x16x1xf32> to vector<16x1xf32>
      %37 = vector.shape_cast %34 : vector<16x1xf32> to vector<1x16x1xf32>
      tpu.vector_store %arg7[%c0_29, %c0_30, %c0_31], %37 {strides = array<i32>} : memref<1x16x1xf32, #tpu.memory_space<vmem>>, vector<1x16x1xf32>,
    } else {
    }
    %c0_10 = arith.constant 0 : index
    %c0_11 = arith.constant 0 : index
    %c0_12 = arith.constant 0 : index
    %13 = vector.load %arg6[%c0_10, %c0_11, %c0_12] : memref<1x16x1xf32, #tpu.memory_space<vmem>>, vector<1x16x1xf32>
    %14 = vector.shape_cast %13 : vector<1x16x1xf32> to vector<16x1xf32>
    %cst_13 = arith.constant dense<0.000000e+00> : vector<16xf32>
    %15 = vector.multi_reduction <add>, %9, %cst_13 [1] : vector<16x128xf32> to vector<16xf32>
    %16 = vector.shape_cast %15 : vector<16xf32> to vector<16x1xf32>
    %17 = arith.addf %14, %16 : vector<16x1xf32>
    %c0_14 = arith.constant 0 : index
    %c0_15 = arith.constant 0 : index
    %c0_16 = arith.constant 0 : index
    %18 = vector.load %arg6[%c0_14, %c0_15, %c0_16] : memref<1x16x1xf32, #tpu.memory_space<vmem>>, vector<1x16x1xf32>
    %19 = vector.shape_cast %18 : vector<1x16x1xf32> to vector<16x1xf32>
    %20 = vector.shape_cast %17 : vector<16x1xf32> to vector<1x16x1xf32>
    tpu.vector_store %arg6[%c0_14, %c0_15, %c0_16], %20 {strides = array<i32>} : memref<1x16x1xf32, #tpu.memory_space<vmem>>, vector<1x16x1xf32>,
    %c0_17 = arith.constant 0 : index
    %c0_18 = arith.constant 0 : index
    %c0_19 = arith.constant 0 : index
    %21 = vector.load %arg7[%c0_17, %c0_18, %c0_19] : memref<1x16x1xf32, #tpu.memory_space<vmem>>, vector<1x16x1xf32>
    %22 = vector.shape_cast %21 : vector<1x16x1xf32> to vector<16x1xf32>
    %23 = arith.mulf %9, %9 : vector<16x128xf32>
    %cst_20 = arith.constant dense<0.000000e+00> : vector<16xf32>
    %24 = vector.multi_reduction <add>, %23, %cst_20 [1] : vector<16x128xf32> to vector<16xf32>
    %25 = vector.shape_cast %24 : vector<16xf32> to vector<16x1xf32>
    %26 = arith.addf %22, %25 : vector<16x1xf32>
    %c0_21 = arith.constant 0 : index
    %c0_22 = arith.constant 0 : index
    %c0_23 = arith.constant 0 : index
    %27 = vector.load %arg7[%c0_21, %c0_22, %c0_23] : memref<1x16x1xf32, #tpu.memory_space<vmem>>, vector<1x16x1xf32>
    %28 = vector.shape_cast %27 : vector<1x16x1xf32> to vector<16x1xf32>
    %29 = vector.shape_cast %26 : vector<16x1xf32> to vector<1x16x1xf32>
    tpu.vector_store %arg7[%c0_21, %c0_22, %c0_23], %29 {strides = array<i32>} : memref<1x16x1xf32, #tpu.memory_space<vmem>>, vector<1x16x1xf32>,
    return
  }
  func.func @transform_0(%arg0: i32, %arg1: i32) -> (i32, i32) {
    %c3_i32 = arith.constant 3 : i32
    %0 = arith.muli %arg0, %c3_i32 : i32
    %1 = arith.addi %0, %arg1 : i32
    %c0_i32 = arith.constant 0 : i32
    %c0_i32_0 = arith.constant 0 : i32
    return %c0_i32, %1 : i32, i32
  }
  func.func @transform_1(%arg0: i32, %arg1: i32) -> (i32, i32) {
    %c0_i32 = arith.constant 0 : i32
    %c0_i32_0 = arith.constant 0 : i32
    %c0_i32_1 = arith.constant 0 : i32
    return %c0_i32, %c0_i32_0 : i32, i32
  }
  func.func @transform_2(%arg0: i32, %arg1: i32) -> (i32, i32) {
    %c0_i32 = arith.constant 0 : i32
    %c0_i32_0 = arith.constant 0 : i32
    %c0_i32_1 = arith.constant 0 : i32
    return %c0_i32, %c0_i32_0 : i32, i32
  }
  func.func @transform_3(%arg0: i32, %arg1: i32) -> (i32, i32) {
    %c0_i32 = arith.constant 0 : i32
    %c0_i32_0 = arith.constant 0 : i32
    %c0_i32_1 = arith.constant 0 : i32
    return %c0_i32, %c0_i32_0 : i32, i32
  }
  func.func @transform_4(%arg0: i32, %arg1: i32) -> (i32, i32, i32) {
    %c0_i32 = arith.constant 0 : i32
    %c0_i32_0 = arith.constant 0 : i32
    %c0_i32_1 = arith.constant 0 : i32
    return %arg0, %c0_i32, %c0_i32_0 : i32, i32, i32
  }
  func.func @transform_5(%arg0: i32, %arg1: i32) -> (i32, i32, i32) {
    %c0_i32 = arith.constant 0 : i32
    %c0_i32_0 = arith.constant 0 : i32
    %c0_i32_1 = arith.constant 0 : i32
    return %arg0, %c0_i32, %c0_i32_0 : i32, i32, i32
  }
}

module attributes {stable_mosaic.version = 11 : i64} {
  func.func @kernel(%arg0: i32, %arg1: i32, %arg2: memref<4x128xf32, #tpu.memory_space<vmem>>, %arg3: memref<32x4xf32, #tpu.memory_space<vmem>>, %arg4: memref<1x32x1xf32, #tpu.memory_space<vmem>>, %arg5: memref<1x32x1xf32, #tpu.memory_space<vmem>>) attributes {dimension_semantics = [#tpu.dimension_semantics<parallel>, #tpu.dimension_semantics<arbitrary>], iteration_bounds = array<i64: 2, 3>, scalar_prefetch = 0 : i64, scratch_operands = 0 : i64, tpu.core_type = #tpu.core_type<tc>, window_params = [{transform_indices = @transform_0, window_bounds = array<i64: 4, 128>}, {pipeline_mode = #tpu.pipeline_mode<synchronous>, transform_indices = @transform_1, window_bounds = array<i64: 32, 4>}, {transform_indices = @transform_2, window_bounds = array<i64: 1, 32, 1>}, {transform_indices = @transform_3, window_bounds = array<i64: 1, 32, 1>}]} {
    %c0 = arith.constant 0 : index
    %c0_0 = arith.constant 0 : index
    %0 = vector.load %arg2[%c0, %c0_0] : memref<4x128xf32, #tpu.memory_space<vmem>>, vector<4x128xf32>
    %c0_1 = arith.constant 0 : index
    %c0_2 = arith.constant 0 : index
    %1 = vector.load %arg3[%c0_1, %c0_2] : memref<32x4xf32, #tpu.memory_space<vmem>>, vector<32x4xf32>
    %cst = arith.constant dense<0.000000e+00> : vector<32x128xf32>
    %2 = tpu.matmul %1, %0, %cst {dimension_numbers = #tpu.dot_dimension_numbers<[1], [0], [0], [1], [0, 0, 1, 1], [], []>} : vector<32x4xf32>, vector<4x128xf32>, vector<32x128xf32> -> vector<32x128xf32>
    %c0_i32 = arith.constant 0 : i32
    %3 = arith.cmpi eq, %arg1, %c0_i32 : i32
    %4 = arith.extui %3 : i1 to i32
    %c0_i32_3 = arith.constant 0 : i32
    %5 = arith.cmpi ne, %4, %c0_i32_3 : i32
    scf.if %5 {
      %cst_18 = arith.constant 0.000000e+00 : f32
      %23 = vector.broadcast %cst_18 : f32 to vector<32x1xf32>
      %c0_19 = arith.constant 0 : index
      %c0_20 = arith.constant 0 : index
      %c0_21 = arith.constant 0 : index
      %24 = vector.load %arg4[%c0_19, %c0_20, %c0_21] : memref<1x32x1xf32, #tpu.memory_space<vmem>>, vector<1x32x1xf32>
      %25 = vector.shape_cast %24 : vector<1x32x1xf32> to vector<32x1xf32>
      %26 = vector.shape_cast %23 : vector<32x1xf32> to vector<1x32x1xf32>
      tpu.vector_store %arg4[%c0_19, %c0_20, %c0_21], %26 {strides = array<i32>} : memref<1x32x1xf32, #tpu.memory_space<vmem>>, vector<1x32x1xf32>,
      %cst_22 = arith.constant 0.000000e+00 : f32
      %27 = vector.broadcast %cst_22 : f32 to vector<32x1xf32>
      %c0_23 = arith.constant 0 : index
      %c0_24 = arith.constant 0 : index
      %c0_25 = arith.constant 0 : index
      %28 = vector.load %arg5[%c0_23, %c0_24, %c0_25] : memref<1x32x1xf32, #tpu.memory_space<vmem>>, vector<1x32x1xf32>
      %29 = vector.shape_cast %28 : vector<1x32x1xf32> to vector<32x1xf32>
      %30 = vector.shape_cast %27 : vector<32x1xf32> to vector<1x32x1xf32>
      tpu.vector_store %arg5[%c0_23, %c0_24, %c0_25], %30 {strides = array<i32>} : memref<1x32x1xf32, #tpu.memory_space<vmem>>, vector<1x32x1xf32>,
    } else {
    }
    %c0_4 = arith.constant 0 : index
    %c0_5 = arith.constant 0 : index
    %c0_6 = arith.constant 0 : index
    %6 = vector.load %arg4[%c0_4, %c0_5, %c0_6] : memref<1x32x1xf32, #tpu.memory_space<vmem>>, vector<1x32x1xf32>
    %7 = vector.shape_cast %6 : vector<1x32x1xf32> to vector<32x1xf32>
    %cst_7 = arith.constant dense<0.000000e+00> : vector<32xf32>
    %8 = vector.multi_reduction <add>, %2, %cst_7 [1] : vector<32x128xf32> to vector<32xf32>
    %9 = vector.shape_cast %8 : vector<32xf32> to vector<32x1xf32>
    %10 = arith.addf %7, %9 : vector<32x1xf32>
    %c0_8 = arith.constant 0 : index
    %c0_9 = arith.constant 0 : index
    %c0_10 = arith.constant 0 : index
    %11 = vector.load %arg4[%c0_8, %c0_9, %c0_10] : memref<1x32x1xf32, #tpu.memory_space<vmem>>, vector<1x32x1xf32>
    %12 = vector.shape_cast %11 : vector<1x32x1xf32> to vector<32x1xf32>
    %13 = vector.shape_cast %10 : vector<32x1xf32> to vector<1x32x1xf32>
    tpu.vector_store %arg4[%c0_8, %c0_9, %c0_10], %13 {strides = array<i32>} : memref<1x32x1xf32, #tpu.memory_space<vmem>>, vector<1x32x1xf32>,
    %c0_11 = arith.constant 0 : index
    %c0_12 = arith.constant 0 : index
    %c0_13 = arith.constant 0 : index
    %14 = vector.load %arg5[%c0_11, %c0_12, %c0_13] : memref<1x32x1xf32, #tpu.memory_space<vmem>>, vector<1x32x1xf32>
    %15 = vector.shape_cast %14 : vector<1x32x1xf32> to vector<32x1xf32>
    %16 = arith.mulf %2, %2 : vector<32x128xf32>
    %cst_14 = arith.constant dense<0.000000e+00> : vector<32xf32>
    %17 = vector.multi_reduction <add>, %16, %cst_14 [1] : vector<32x128xf32> to vector<32xf32>
    %18 = vector.shape_cast %17 : vector<32xf32> to vector<32x1xf32>
    %19 = arith.addf %15, %18 : vector<32x1xf32>
    %c0_15 = arith.constant 0 : index
    %c0_16 = arith.constant 0 : index
    %c0_17 = arith.constant 0 : index
    %20 = vector.load %arg5[%c0_15, %c0_16, %c0_17] : memref<1x32x1xf32, #tpu.memory_space<vmem>>, vector<1x32x1xf32>
    %21 = vector.shape_cast %20 : vector<1x32x1xf32> to vector<32x1xf32>
    %22 = vector.shape_cast %19 : vector<32x1xf32> to vector<1x32x1xf32>
    tpu.vector_store %arg5[%c0_15, %c0_16, %c0_17], %22 {strides = array<i32>} : memref<1x32x1xf32, #tpu.memory_space<vmem>>, vector<1x32x1xf32>,
    return
  }
  func.func @transform_0(%arg0: i32, %arg1: i32) -> (i32, i32) {
    %c3_i32 = arith.constant 3 : i32
    %0 = arith.muli %arg0, %c3_i32 : i32
    %1 = arith.addi %0, %arg1 : i32
    %c0_i32 = arith.constant 0 : i32
    %c0_i32_0 = arith.constant 0 : i32
    return %c0_i32, %1 : i32, i32
  }
  func.func @transform_1(%arg0: i32, %arg1: i32) -> (i32, i32) {
    %c0_i32 = arith.constant 0 : i32
    %c0_i32_0 = arith.constant 0 : i32
    %c0_i32_1 = arith.constant 0 : i32
    return %c0_i32, %c0_i32_0 : i32, i32
  }
  func.func @transform_2(%arg0: i32, %arg1: i32) -> (i32, i32, i32) {
    %c0_i32 = arith.constant 0 : i32
    %c0_i32_0 = arith.constant 0 : i32
    %c0_i32_1 = arith.constant 0 : i32
    return %arg0, %c0_i32, %c0_i32_0 : i32, i32, i32
  }
  func.func @transform_3(%arg0: i32, %arg1: i32) -> (i32, i32, i32) {
    %c0_i32 = arith.constant 0 : i32
    %c0_i32_0 = arith.constant 0 : i32
    %c0_i32_1 = arith.constant 0 : i32
    return %arg0, %c0_i32, %c0_i32_0 : i32, i32, i32
  }
}

module attributes {stable_mosaic.version = 11 : i64} {
  func.func @kernel(%arg0: i32, %arg1: memref<4x128xf32, #tpu.memory_space<vmem>>, %arg2: memref<32x4xf32, #tpu.memory_space<vmem>>, %arg3: memref<16x32xf32, #tpu.memory_space<vmem>>, %arg4: memref<32x1xf32, #tpu.memory_space<vmem>>, %arg5: memref<16x1xf32, #tpu.memory_space<vmem>>, %arg6: memref<16x128xf32, #tpu.memory_space<vmem>>) attributes {dimension_semantics = [#tpu.dimension_semantics<parallel>], iteration_bounds = array<i64: 6>, scalar_prefetch = 0 : i64, scratch_operands = 0 : i64, tpu.core_type = #tpu.core_type<tc>, window_params = [{transform_indices = @transform_0, window_bounds = array<i64: 4, 128>}, {pipeline_mode = #tpu.pipeline_mode<synchronous>, transform_indices = @transform_1, window_bounds = array<i64: 32, 4>}, {pipeline_mode = #tpu.pipeline_mode<synchronous>, transform_indices = @transform_2, window_bounds = array<i64: 16, 32>}, {pipeline_mode = #tpu.pipeline_mode<synchronous>, transform_indices = @transform_3, window_bounds = array<i64: 32, 1>}, {pipeline_mode = #tpu.pipeline_mode<synchronous>, transform_indices = @transform_4, window_bounds = array<i64: 16, 1>}, {transform_indices = @transform_5, window_bounds = array<i64: 16, 128>}]} {
    %c0 = arith.constant 0 : index
    %c0_0 = arith.constant 0 : index
    %0 = vector.load %arg1[%c0, %c0_0] : memref<4x128xf32, #tpu.memory_space<vmem>>, vector<4x128xf32>
    %c0_1 = arith.constant 0 : index
    %c0_2 = arith.constant 0 : index
    %1 = vector.load %arg2[%c0_1, %c0_2] : memref<32x4xf32, #tpu.memory_space<vmem>>, vector<32x4xf32>
    %cst = arith.constant dense<0.000000e+00> : vector<32x128xf32>
    %2 = tpu.matmul %1, %0, %cst {dimension_numbers = #tpu.dot_dimension_numbers<[1], [0], [0], [1], [0, 0, 1, 1], [], []>} : vector<32x4xf32>, vector<4x128xf32>, vector<32x128xf32> -> vector<32x128xf32>
    %c0_3 = arith.constant 0 : index
    %c0_4 = arith.constant 0 : index
    %3 = vector.load %arg4[%c0_3, %c0_4] : memref<32x1xf32, #tpu.memory_space<vmem>>, vector<32x1xf32>
    %4 = vector.broadcast %3 : vector<32x1xf32> to vector<32x128xf32>
    %5 = arith.addf %2, %4 : vector<32x128xf32>
    %cst_5 = arith.constant 0.000000e+00 : f32
    %6 = vector.broadcast %cst_5 : f32 to vector<32x128xf32>
    %7 = arith.maximumf %5, %6 : vector<32x128xf32>
    %c0_6 = arith.constant 0 : index
    %c0_7 = arith.constant 0 : index
    %8 = vector.load %arg3[%c0_6, %c0_7] : memref<16x32xf32, #tpu.memory_space<vmem>>, vector<16x32xf32>
    %cst_8 = arith.constant dense<0.000000e+00> : vector<16x128xf32>
    %9 = tpu.matmul %8, %7, %cst_8 {dimension_numbers = #tpu.dot_dimension_numbers<[1], [0], [0], [1], [0, 0, 1, 1], [], []>} : vector<16x32xf32>, vector<32x128xf32>, vector<16x128xf32> -> vector<16x128xf32>
    %c0_9 = arith.constant 0 : index
    %c0_10 = arith.constant 0 : index
    %10 = vector.load %arg5[%c0_9, %c0_10] : memref<16x1xf32, #tpu.memory_space<vmem>>, vector<16x1xf32>
    %11 = vector.broadcast %10 : vector<16x1xf32> to vector<16x128xf32>
    %12 = arith.addf %9, %11 : vector<16x128xf32>
    %c0_11 = arith.constant 0 : index
    %c0_12 = arith.constant 0 : index
    %13 = vector.load %arg6[%c0_11, %c0_12] : memref<16x128xf32, #tpu.memory_space<vmem>>, vector<16x128xf32>
    tpu.vector_store %arg6[%c0_11, %c0_12], %12 {strides = array<i32>} : memref<16x128xf32, #tpu.memory_space<vmem>>, vector<16x128xf32>,
    return
  }
  func.func @transform_0(%arg0: i32) -> (i32, i32) {
    %c0_i32 = arith.constant 0 : i32
    %c0_i32_0 = arith.constant 0 : i32
    return %c0_i32, %arg0 : i32, i32
  }
  func.func @transform_1(%arg0: i32) -> (i32, i32) {
    %c0_i32 = arith.constant 0 : i32
    %c0_i32_0 = arith.constant 0 : i32
    %c0_i32_1 = arith.constant 0 : i32
    return %c0_i32, %c0_i32_0 : i32, i32
  }
  func.func @transform_2(%arg0: i32) -> (i32, i32) {
    %c0_i32 = arith.constant 0 : i32
    %c0_i32_0 = arith.constant 0 : i32
    %c0_i32_1 = arith.constant 0 : i32
    return %c0_i32, %c0_i32_0 : i32, i32
  }
  func.func @transform_3(%arg0: i32) -> (i32, i32) {
    %c0_i32 = arith.constant 0 : i32
    %c0_i32_0 = arith.constant 0 : i32
    %c0_i32_1 = arith.constant 0 : i32
    return %c0_i32, %c0_i32_0 : i32, i32
  }
  func.func @transform_4(%arg0: i32) -> (i32, i32) {
    %c0_i32 = arith.constant 0 : i32
    %c0_i32_0 = arith.constant 0 : i32
    %c0_i32_1 = arith.constant 0 : i32
    return %c0_i32, %c0_i32_0 : i32, i32
  }
  func.func @transform_5(%arg0: i32) -> (i32, i32) {
    %c0_i32 = arith.constant 0 : i32
    %c0_i32_0 = arith.constant 0 : i32
    return %c0_i32, %arg0 : i32, i32
  }
}

</mosaic_0001>

<bundles_post_ra>
// kernel: fc_forward.3
= control target key start
LH: loop header
LB: loop body
LE: loop exit
PB: predicated region body
PF: predicated region fallthrough
CT: control target
= control target key end

     0   :  { %s608_s12 = smov 0   ;;  %s610_s13 = smov 0   ;;  %s718_s0 = inlined_call_operand.vmem [shape: f32[4,768], index: 0, kind: input, shape index: {}]   ;;  %s719_s1 = inlined_call_operand.vmem [shape: f32[32,4], index: 1, kind: input, shape index: {}]   ;;  %s720_s2 = inlined_call_operand.vmem [shape: f32[2,32,1], index: 2, kind: output, shape index: {0}]   ;;  %s721_s3 = inlined_call_operand.vmem [shape: f32[2,32,1], index: 3, kind: output, shape index: {1}]  }
   0x1   :  { %s612_s14 = smov 0   ;;  %s614_s15 = smov 0  }
   0x2   :  { %s616_s16 = smov 0  }
   0x3 LB: > { %s23_s17 = sadd.s32 1, %s577_s14  ;;  %s26_s18 = sadd.s32 1, %s581_s15  ;;  %s585_s16 = sphi %s616_s16, %s14_s16   ;;  %s581_s15 = sphi %s614_s15, %s725_s15   ;;  %s577_s14 = sphi %s612_s14, %s724_s14   ;;  %s573_s13 = sphi %s610_s13, %s723_s13   ;;  %s569_s12 = sphi %s608_s12, %s722_s12  }
   0x4   : > { %p24_p0 = scmp.ge.s32.totalorder %s23_s17, 3  ;;  %p475_p1 = scmp.ge.s32.totalorder %s585_s16, 1 }
   0x5   : > { %p159_p2 = scmp.lt.s32.totalorder %s585_s16, 7 }
   0x6   : > { %s727_s17 = smov (%p24_p0, %s23_s17), 0  ;;  %s729_s18 = smov (!%p24_p0, %s26_s18), %s581_s15 }
   0x7   : > { %p160_p3 = pnand %p475_p1, %p159_p2  ;;  %p28_p4 = scmp.ge.s32.totalorder %s729_s18, 2 }
   0x8   : > { %s189_s19 = smul.u32 (!%p160_p3), 3, %s573_s13  ;;  %p197_p5 = scmp.lt.s32.totalorder (!%p160_p3), %s573_s13, 1 }
   0x9   : > { %s731_s18 = smov (%p28_p4, %s729_s18), 0  ;;  %163 = sbr.rel (%p160_p3) target bundleno = 373 (0x175), region = 28 }
   0xa   : > { %s190_s24 = sadd.s32 (!%p160_p3), %s569_s12, %s189_s19  ;;  %p486_p7 = scmp.ne.s32.totalorder (!%p160_p3), %s569_s12, 0 }
   0xb   : > { %p191_p6 = scmp.lt.s32.totalorder (!%p160_p3), %s190_s24, 5 }
   0xe   : > { %v208_v0 = vld [vmem:[%s719_s1] sm:$0xff]  ;;  %vm212_vm0 = vcmask 31744   ;;  %v210_v1 = vld [vmem:[%s719_s1 + $0x10] sm:$0xff]  ;;  %s733_s13 = smov (!%p197_p5, %s573_s13), 1  ;;  %s735_s24 = smov (!%p191_p6, %s190_s24), 5  ;;  %vm225_vm1 = vcmask 1043456  }
   0xf   : > { %498 = vmatprep.mubr.msk.f32.mxu0 %vm212_vm0, %v208_v0  ;;  %501 = vmatprep.mubr.msk.f32.mxu1 %vm212_vm0, %v210_v1  ;;  %s489_s25 = sshll.u32 %s733_s13, 5  ;;  %s476_s26 = sshll.u32 %s735_s24, 2  ;;  %v209_v3 = vld [vmem:[%s719_s1 + $0x8] sm:$0xff]  ;;  %v211_v4 = vld [vmem:[%s719_s1 + $0x18] sm:$0xff] }
  0x10   : > { %s652_s29 = scalar_lea.vmem %s720_s2, %s489_s25  ;;  %s194_s5 = scalar_lea.vmem %s718_s0, %s476_s26 }
  0x11   : > { %s660_s8 = scalar_lea.vmem %s721_s3, %s489_s25  ;;  %v207_v2 = vld [vmem:[%s194_s5] sm:$0xf] }
  0x12   : > { %496 = vmatprep.subr.msk.mxu0 %vm225_vm1, %v207_v2  ;;  %504 = vmatprep.subr.msk.mxu1 %vm225_vm1, %v207_v2 }
  0x13   : > { %497 = vmatpush3.msk.msra.mxu0 %vm225_vm1, %v207_v2  ;;  %505 = vmatpush3.msk.msra.mxu1 %vm225_vm1, %v207_v2 }
  0x14   : > { %499 = vmatmul.mubr.msk.f32.vlgmr.msra.gmra.mxu0 %vm212_vm0, %v209_v3  ;;  %502 = vmatmul.mubr.msk.f32.vlgmr.msra.gmra.mxu1 %vm212_vm0, %v211_v4 }
  0xd2   : > { %317 = sbr.rel (%p486_p7) target bundleno = 220 (0xdc), region = 32 }
  0xd4   : > { %v500_v5 = vpop.f32.mrf.mxu0  ;;  %v503_v6 = vpop.f32.mrf.mxu1 }
  0xd6   : > { %v295_v7 = vpop.f32.mrf.mxu0  ;;  %v305_v8 = vpop.f32.mrf.mxu1 }
  0xd7   : > { %vm318_vm2 = vcmask 7168   ;;  %v587_v9 = vmov 0.0  }
  0xd8   : > { %319 = vst.msk [vmem:[%s652_s29] sm:$0xff] %vm318_vm2, %v587_v9  ;;  %320 = vst.msk [vmem:[%s652_s29 + $0x8] sm:$0xff] %vm318_vm2, %v587_v9 }
  0xd9   : > { %321 = vst.msk [vmem:[%s652_s29 + $0x10] sm:$0xff] %vm318_vm2, %v587_v9  ;;  %322 = vst.msk [vmem:[%s652_s29 + $0x18] sm:$0xff] %vm318_vm2, %v587_v9 }
  0xda   : > { %323 = vst.msk [vmem:[%s660_s8] sm:$0xff] %vm318_vm2, %v587_v9  ;;  %324 = vst.msk [vmem:[%s660_s8 + $0x8] sm:$0xff] %vm318_vm2, %v587_v9 }
  0xdb   : > { %325 = vst.msk [vmem:[%s660_s8 + $0x10] sm:$0xff] %vm318_vm2, %v587_v9  ;;  %326 = vst.msk [vmem:[%s660_s8 + $0x18] sm:$0xff] %vm318_vm2, %v587_v9 }
  0xdc PF: > { %335 = vadd.xlane.f32.xlu1 %v305_v8  ;;  %331 = vadd.xlane.f32.xlu0 %v295_v7  ;;  %v353_v10 = vmul.f32 %v500_v5, %v500_v5  ;;  %v352_v11 = vmul.f32 %v295_v7, %v295_v7  ;;  %v355_v12 = vmul.f32 %v503_v6, %v503_v6  ;;  %vm343_vm3 = vcmask 7168  }
  0xdd   : > { %v354_v13 = vmul.f32 %v305_v8, %v305_v8 }
  0xdf   : > { %v327_v15 = vld [vmem:[%s652_s29] sm:$0xff]  ;;  %v328_v21 = vld [vmem:[%s652_s29 + $0x8] sm:$0xff] }
  0xe0   : > { %337 = vadd.xlane.f32.xlu1 %v503_v6  ;;  %333 = vadd.xlane.f32.xlu0 %v500_v5  ;;  %v329_v14 = vld [vmem:[%s652_s29 + $0x10] sm:$0xff]  ;;  %v330_v20 = vld [vmem:[%s652_s29 + $0x18] sm:$0xff] }
  0xe1   : > { %v349_v26 = vld [vmem:[%s660_s8 + $0x8] sm:$0xff]  ;;  %v348_v27 = vld [vmem:[%s660_s8] sm:$0xff] }
  0xe2   : > { %v351_v32 = vld [vmem:[%s660_s8 + $0x18] sm:$0xff]  ;;  %v350_v33 = vld [vmem:[%s660_s8 + $0x10] sm:$0xff] }
  0xe4   : > { %358 = vadd.xlane.f32.xlu1 %v353_v10  ;;  %356 = vadd.xlane.f32.xlu0 %v352_v11 }
  0xe8   : > { %362 = vadd.xlane.f32.xlu1 %v355_v12  ;;  %360 = vadd.xlane.f32.xlu0 %v354_v13 }
 0x165   : > { %v336_v16 = vpop.xlane.xlu1 %335  ;;  %v332_v17 = vpop.xlane.xlu0 %331 }
 0x166   : > { %v341_v18 = vadd.f32 %v336_v16, %v329_v14  ;;  %v339_v19 = vadd.f32 %v332_v17, %v327_v15 }
 0x168   : > { %346 = vst.msk [vmem:[%s652_s29 + $0x10] sm:$0xff] %vm343_vm3, %v341_v18  ;;  %344 = vst.msk [vmem:[%s652_s29] sm:$0xff] %vm343_vm3, %v339_v19 }
 0x169   : > { %v338_v22 = vpop.xlane.xlu1 %337  ;;  %v334_v23 = vpop.xlane.xlu0 %333 }
 0x16a   : > { %v342_v24 = vadd.f32 %v338_v22, %v330_v20  ;;  %v340_v25 = vadd.f32 %v334_v23, %v328_v21 }
 0x16c   : > { %347 = vst.msk [vmem:[%s652_s29 + $0x18] sm:$0xff] %vm343_vm3, %v342_v24  ;;  %345 = vst.msk [vmem:[%s652_s29 + $0x8] sm:$0xff] %vm343_vm3, %v340_v25 }
 0x16d   : > { %v359_v28 = vpop.xlane.xlu1 %358  ;;  %v357_v29 = vpop.xlane.xlu0 %356 }
 0x16e   : > { %v365_v30 = vadd.f32 %v359_v28, %v349_v26  ;;  %v364_v31 = vadd.f32 %v357_v29, %v348_v27 }
 0x170   : > { %369 = vst.msk [vmem:[%s660_s8 + $0x8] sm:$0xff] %vm343_vm3, %v365_v30  ;;  %368 = vst.msk [vmem:[%s660_s8] sm:$0xff] %vm343_vm3, %v364_v31 }
 0x171   : > { %v363_v34 = vpop.xlane.xlu1 %362  ;;  %v361_v35 = vpop.xlane.xlu0 %360 }
 0x172   : > { %v367_v36 = vadd.f32 %v363_v34, %v351_v32  ;;  %v366_v37 = vadd.f32 %v361_v35, %v350_v33 }
 0x174   : > { %371 = vst.msk [vmem:[%s660_s8 + $0x18] sm:$0xff] %vm343_vm3, %v367_v36  ;;  %370 = vst.msk [vmem:[%s660_s8 + $0x10] sm:$0xff] %vm343_vm3, %v366_v37 }
 0x175 PF: > { %s14_s16 = sadd.s32 1, %s585_s16   ;;  %s722_s12 = smov %s577_s14 }
 0x176   : > { %p11_p8 = scmp.ge.s32.totalorder %s14_s16, 8   ;;  %s723_s13 = smov %s581_s15 }
 0x177   : > { %s724_s14 = smov %s727_s17  ;;  %s725_s15 = smov %s731_s18 }
 0x178   :  { %13 = sbr.rel (!%p11_p8) target bundleno = 3 (0x3), region = 74 }

// kernel: fc_forward.4
= control target key start
LH: loop header
LB: loop body
LE: loop exit
PB: predicated region body
PF: predicated region fallthrough
CT: control target
= control target key end

     0   :  { %s779_s18 = smov 0   ;;  %s781_s19 = smov 0   ;;  %s889_s0 = inlined_call_operand.vmem [shape: f32[4,768], index: 0, kind: input, shape index: {}]   ;;  %s890_s1 = inlined_call_operand.vmem [shape: f32[32,4], index: 1, kind: input, shape index: {}]   ;;  %s891_s2 = inlined_call_operand.vmem [shape: f32[16,32], index: 2, kind: input, shape index: {}]   ;;  %s892_s3 = inlined_call_operand.vmem [shape: f32[32,1], index: 3, kind: input, shape index: {}]   ;;  %s893_s4 = inlined_call_operand.vmem [shape: f32[2,16,1], index: 4, kind: output, shape index: {0}]   ;;  %s894_s5 = inlined_call_operand.vmem [shape: f32[2,16,1], index: 5, kind: output, shape index: {1}]  }
   0x1   :  { %s783_s20 = smov 0   ;;  %s785_s21 = smov 0  }
   0x2   :  { %s787_s22 = smov 0  }
   0x3 LB: > { %s25_s23 = sadd.s32 1, %s737_s20  ;;  %s28_s24 = sadd.s32 1, %s741_s21  ;;  %s745_s22 = sphi %s787_s22, %s16_s22   ;;  %s741_s21 = sphi %s785_s21, %s898_s21   ;;  %s737_s20 = sphi %s783_s20, %s897_s20   ;;  %s733_s19 = sphi %s781_s19, %s896_s19   ;;  %s729_s18 = sphi %s779_s18, %s895_s18  }
   0x4   : > { %p26_p0 = scmp.ge.s32.totalorder %s25_s23, 3  ;;  %p615_p1 = scmp.ge.s32.totalorder %s745_s22, 1 }
   0x5   : > { %p209_p2 = scmp.lt.s32.totalorder %s745_s22, 7 }
   0x6   : > { %s900_s23 = smov (%p26_p0, %s25_s23), 0  ;;  %s902_s24 = smov (!%p26_p0, %s28_s24), %s741_s21 }
   0x7   : > { %p210_p3 = pnand %p615_p1, %p209_p2  ;;  %p30_p4 = scmp.ge.s32.totalorder %s902_s24, 2 }
   0x8   : > { %s243_s25 = smul.u32 (!%p210_p3), 3, %s733_s19  ;;  %p251_p5 = scmp.lt.s32.totalorder (!%p210_p3), %s733_s19, 1 }
   0x9   : > { %s904_s24 = smov (%p30_p4, %s902_s24), 0  ;;  %213 = sbr.rel (%p210_p3) target bundleno = 575 (0x23f), region = 36 }
   0xa   : > { %s244_s30 = sadd.s32 (!%p210_p3), %s729_s18, %s243_s25  ;;  %p628_p7 = scmp.ne.s32.totalorder (!%p210_p3), %s729_s18, 0 }
   0xb   : > { %p245_p6 = scmp.lt.s32.totalorder (!%p210_p3), %s244_s30, 5 }
   0xe   : > { %v262_v0 = vld [vmem:[%s890_s1] sm:$0xff]  ;;  %vm290_vm0 = vcmask 31744   ;;  %v269_v1 = vld [vmem:[%s892_s3 + $0x18] sm:$0xff]  ;;  %v747_v2 = vmov 0   ;;  %v267_v3 = vld [vmem:[%s892_s3 + $0x8] sm:$0xff]  ;;  %s906_s19 = smov (!%p251_p5, %s733_s19), 1 }
   0xf   : > { %646 = vmatprep.mubr.msk.f32.mxu0 %vm290_vm0, %v262_v0  ;;  %706 = vset.pattern.permute.xlu1 %v747_v2  ;;  %v268_v4 = vld [vmem:[%s892_s3 + $0x10] sm:$0xff]  ;;  %v266_v5 = vld [vmem:[%s892_s3] sm:$0xff]  ;;  %s908_s30 = smov (!%p245_p6, %s244_s30), 5  ;;  %s631_s12 = sshll.u32 %s906_s19, 4  ;;  %vm303_vm1 = vcmask 1043456   ;;  %v263_v7 = vld [vmem:[%s890_s1 + $0x8] sm:$0xff] }
  0x10   : > { %705 = vset.pattern.permute.xlu0 %v747_v2  ;;  %277 = vperm.xlu1 %706, %v267_v3   ;;  %s616_s13 = sshll.u32 %s908_s30, 2  ;;  %s831_s16 = scalar_lea.vmem %s893_s4, %s631_s12  ;;  %v264_v8 = vld [vmem:[%s890_s1 + $0x10] sm:$0xff]  ;;  %v265_v9 = vld [vmem:[%s890_s1 + $0x18] sm:$0xff]  ;;  %v396_v10 = vld [vmem:[%s891_s2] sm:$0xff]  ;;  %vm398_vm2 = vcmask 261120  }
  0x11   : > { %287 = vperm.xlu0 %705, %v269_v1   ;;  %s248_s26 = scalar_lea.vmem %s889_s0, %s616_s13  ;;  %s839_s29 = scalar_lea.vmem %s894_s5, %s631_s12  ;;  %660 = vmatprep.mubr.msk.f32.mxu1 %vm398_vm2, %v396_v10  ;;  %v397_v27 = vld [vmem:[%s891_s2 + $0x8] sm:$0xff] }
  0x12   : > { %v261_v6 = vld [vmem:[%s248_s26] sm:$0xf] }
  0x13   : > { %644 = vmatprep.subr.msk.mxu0 %vm303_vm1, %v261_v6 }
  0x14   : > { %272 = vperm.xlu1 %706, %v266_v5   ;;  %645 = vmatpush3.msk.msra.mxu0 %vm303_vm1, %v261_v6 }
  0x15   : > { %282 = vperm.xlu0 %705, %v268_v4   ;;  %647 = vmatmul.mubr.msk.f32.vlgmr.msra.gmra.mxu0 %vm290_vm0, %v263_v7 }
  0x16   : > { %649 = vmatprep.mubr.msk.f32.mxu0 %vm290_vm0, %v264_v8 }
  0x19   : > { %650 = vmatmul.mubr.msk.f32.gmra.mxu0 %vm290_vm0, %v265_v9 }
  0x8b   : > { %v278_v12 = vpop.permute.xlu1 %277 }
  0x8c   : > { %v288_v11 = vpop.permute.xlu0 %287 }
  0x8f   : > { %v273_v18 = vpop.permute.xlu1 %272 }
  0x90   : > { %v283_v16 = vpop.permute.xlu0 %282 }
  0xd5   : > { %v648_v13 = vpop.f32.mrf.mxu0 }
  0xd6   : > { %v379_v20 = vadd.f32 %v648_v13, %v278_v12 }
  0xd7   : > { %v373_v14 = vpop.f32.mrf.mxu0 }
  0xd8   : > { %v374_v23 = vadd.f32 %v373_v14, %v273_v18  ;;  %v393_v25 = vmax.f32 %v379_v20, 0.0 }
  0xd9   : > { %v651_v15 = vpop.f32.mrf.mxu0 }
  0xda   : > { %v389_v17 = vadd.f32 %v651_v15, %v288_v11  ;;  %v392_v26 = vmax.f32 %v374_v23, 0.0 }
  0xdb   : > { %v383_v19 = vpop.f32.mrf.mxu0 }
  0xdc   : > { %v395_v21 = vmax.f32 %v389_v17, 0.0  ;;  %v384_v22 = vadd.f32 %v383_v19, %v283_v16 }
  0xde   : > { %v394_v24 = vmax.f32 %v384_v22, 0.0  ;;  %652 = vmatprep.subr.mxu1 %v395_v21 }
  0xdf   : > { %653 = vmatpush3.msra.mxu1 %v395_v21 }
  0xe0   : > { %654 = vmatprep.subr.mxu1 %v394_v24 }
  0xe1   : > { %655 = vmatpush3.msra.mxu1 %v394_v24 }
  0xe2   : > { %656 = vmatprep.subr.mxu1 %v393_v25 }
  0xe3   : > { %657 = vmatpush3.msra.mxu1 %v393_v25 }
  0xe4   : > { %658 = vmatprep.subr.mxu1 %v392_v26 }
  0xe5   : > { %659 = vmatpush3.msra.mxu1 %v392_v26 }
  0xe6   : > { %661 = vmatmul.mubr.msk.f32.vlgmr.msra.gmra.mxu1 %vm398_vm2, %v397_v27 }
 0x1a4   : > { %483 = sbr.rel (%p628_p7) target bundleno = 428 (0x1ac), region = 40 }
 0x1a6   : > { %v662_v28 = vpop.f32.mrf.mxu1 }
 0x1a8   : > { %v471_v29 = vpop.f32.mrf.mxu1 }
 0x1a9   : > { %vm484_vm3 = vcmask 7168   ;;  %v748_v30 = vmov 0.0  }
 0x1aa   : > { %485 = vst.msk [vmem:[%s831_s16] sm:$0xff] %vm484_vm3, %v748_v30  ;;  %486 = vst.msk [vmem:[%s831_s16 + $0x8] sm:$0xff] %vm484_vm3, %v748_v30 }
 0x1ab   : > { %487 = vst.msk [vmem:[%s839_s29] sm:$0xff] %vm484_vm3, %v748_v30  ;;  %488 = vst.msk [vmem:[%s839_s29 + $0x8] sm:$0xff] %vm484_vm3, %v748_v30 }
 0x1ac PF: > { %491 = vadd.xlane.f32.xlu0 %v471_v29  ;;  %v502_v31 = vmul.f32 %v471_v29, %v471_v29  ;;  %v503_v32 = vmul.f32 %v662_v28, %v662_v28  ;;  %vm497_vm4 = vcmask 7168  }
 0x1ae   : > { %504 = vadd.xlane.f32.xlu1 %v502_v31 }
 0x1b0   : > { %493 = vadd.xlane.f32.xlu0 %v662_v28 }
 0x1b1   : > { %v489_v33 = vld [vmem:[%s831_s16] sm:$0xff]  ;;  %v490_v38 = vld [vmem:[%s831_s16 + $0x8] sm:$0xff] }
 0x1b2   : > { %506 = vadd.xlane.f32.xlu1 %v503_v32  ;;  %v500_v35 = vld [vmem:[%s839_s29] sm:$0xff]  ;;  %v501_v41 = vld [vmem:[%s839_s29 + $0x8] sm:$0xff] }
 0x235   : > { %v492_v34 = vpop.xlane.xlu0 %491 }
 0x236   : > { %v495_v36 = vadd.f32 %v492_v34, %v489_v33 }
 0x237   : > { %v505_v37 = vpop.xlane.xlu1 %504 }
 0x238   : > { %498 = vst.msk [vmem:[%s831_s16] sm:$0xff] %vm497_vm4, %v495_v36  ;;  %v508_v39 = vadd.f32 %v505_v37, %v500_v35 }
 0x239   : > { %v494_v40 = vpop.xlane.xlu0 %493 }
 0x23a   : > { %510 = vst.msk [vmem:[%s839_s29] sm:$0xff] %vm497_vm4, %v508_v39  ;;  %v496_v42 = vadd.f32 %v494_v40, %v490_v38 }
 0x23b   : > { %v507_v43 = vpop.xlane.xlu1 %506 }
 0x23c   : > { %499 = vst.msk [vmem:[%s831_s16 + $0x8] sm:$0xff] %vm497_vm4, %v496_v42  ;;  %v509_v44 = vadd.f32 %v507_v43, %v501_v41 }
 0x23e   : > { %511 = vst.msk [vmem:[%s839_s29 + $0x8] sm:$0xff] %vm497_vm4, %v509_v44 }
 0x23f PF: > { %s16_s22 = sadd.s32 1, %s745_s22   ;;  %s895_s18 = smov %s737_s20 }
 0x240   : > { %p13_p8 = scmp.ge.s32.totalorder %s16_s22, 8   ;;  %s896_s19 = smov %s741_s21 }
 0x241   : > { %s897_s20 = smov %s900_s23  ;;  %s898_s21 = smov %s904_s24 }
 0x242   :  { %15 = sbr.rel (!%p13_p8) target bundleno = 3 (0x3), region = 82 }

// kernel: fc_forward.5
= control target key start
LH: loop header
LB: loop body
LE: loop exit
PB: predicated region body
PF: predicated region fallthrough
CT: control target
= control target key end

     0   :  { %s675_s18 = smov 0   ;;  %s677_s19 = smov 0   ;;  %s768_s0 = inlined_call_operand.vmem [shape: f32[4,768], index: 0, kind: input, shape index: {}]   ;;  %s769_s1 = inlined_call_operand.vmem [shape: f32[32,4], index: 1, kind: input, shape index: {}]   ;;  %s770_s2 = inlined_call_operand.vmem [shape: f32[16,32], index: 2, kind: input, shape index: {}]   ;;  %s771_s3 = inlined_call_operand.vmem [shape: f32[32,1], index: 3, kind: input, shape index: {}]   ;;  %s772_s4 = inlined_call_operand.vmem [shape: f32[16,1], index: 4, kind: input, shape index: {}]   ;;  %s773_s5 = inlined_call_operand.vmem [shape: f32[16,768], index: 5, kind: output, shape index: {}]  }
   0x1   :  { %s679_s20 = smov 0  }
   0x2 LB: > { %s688_s21 = sadd.s32 4294967295, %s642_s20   ;;  %s690_s22 = sadd.s32 1, %s642_s20   ;;  %s642_s20 = sphi %s679_s20, %s777_s20   ;;  %s638_s19 = sphi %s677_s19, %s776_s19   ;;  %s634_s18 = sphi %s675_s18, %s775_s18  }
   0x3   : > { %s129_s23 = ssub.s32 %s642_s20, %s690_s22  ;;  %s132_s24 = sadd.s32 1, %s638_s19 }
   0x4   : > { %p130_p0 = scmp.eq.s32.totalorder %s129_s23, 0  ;;  %p142_p1 = scmp.ne.s32.totalorder %s638_s19, %s634_s18 }
   0x5   : > { %p143_p2 = scmp.eq.s32.totalorder %s688_s21, 5  ;;  %p549_p3 = scmp.ge.s32.totalorder %s642_s20, 1 }
   0x6   : > { %s698_s25 = scalar_select %p130_p0, %s638_s19, %s132_s24  }
   0x7   : > { %p700_p4 = por %p143_p2, %p142_p1  ;;  %p186_p5 = scmp.lt.s32.totalorder %s642_s20, 7 }
   0x9   : > { %p187_p6 = pnand %p549_p3, %p186_p5 }
   0xa   : > { %p212_p7 = scmp.lt.s32.totalorder (!%p187_p6), %s688_s21, 5  ;;  %s209_s12 = sand.u32 (!%p187_p6), 1, %s634_s18  }
   0xb   : > { %190 = sbr.rel (%p187_p6) target bundleno = 438 (0x1b6), region = 40  ;;  %s550_s13 = sshll.u32 (!%p187_p6), %s209_s12, 4 }
  0x10   : > { %v217_v0 = vld [vmem:[%s769_s1] sm:$0xff]  ;;  %vm245_vm0 = vcmask 31744   ;;  %v224_v1 = vld [vmem:[%s771_s3 + $0x18] sm:$0xff]  ;;  %s213_s6 = scalar_select %p212_p7, %s688_s21, 5  ;;  %v644_v2 = vmov 0   ;;  %v222_v3 = vld [vmem:[%s771_s3 + $0x8] sm:$0xff] }
  0x11   : > { %576 = vmatprep.mubr.msk.f32.mxu0 %vm245_vm0, %v217_v0  ;;  %618 = vset.pattern.permute.xlu0 %v644_v2  ;;  %vm258_vm1 = vcmask 1043456   ;;  %v223_v4 = vld [vmem:[%s771_s3 + $0x10] sm:$0xff]  ;;  %v221_v5 = vld [vmem:[%s771_s3] sm:$0xff]  ;;  %v218_v7 = vld [vmem:[%s769_s1 + $0x8] sm:$0xff]  ;;  %vm365_vm2 = vcmask 261120   ;;  %s560_s15 = sshll.u32 (%p700_p4), %s688_s21, 3 }
  0x12   : > { %619 = vset.pattern.permute.xlu1 %v644_v2  ;;  %242 = vperm.xlu0 %618, %v224_v1   ;;  %s551_s9 = sshll.u32 %s213_s6, 2  ;;  %v219_v8 = vld [vmem:[%s769_s1 + $0x10] sm:$0xff]  ;;  %v353_v9 = vld [vmem:[%s772_s4] sm:$0xff]  ;;  %v354_v10 = vld [vmem:[%s772_s4 + $0x8] sm:$0xff]  ;;  %s457_s18 = scalar_lea.vmem (%p700_p4), %s773_s5, %s560_s15 }
  0x13   : > { %232 = vperm.xlu1 %619, %v222_v3   ;;  %s215_s14 = scalar_lea.vmem %s768_s0, %s551_s9  ;;  %v220_v11 = vld [vmem:[%s769_s1 + $0x18] sm:$0xff]  ;;  %v351_v12 = vld [vmem:[%s770_s2] sm:$0xff]  ;;  %v352_v29 = vld [vmem:[%s770_s2 + $0x8] sm:$0xff] }
  0x14   : > { %v216_v6 = vld [vmem:[%s215_s14] sm:$0xf]  ;;  %590 = vmatprep.mubr.msk.f32.mxu1 %vm365_vm2, %v351_v12  ;;  %s211_s14 = scalar_lea.vmem [#allocation2], %s550_s13 }
  0x15   : > { %574 = vmatprep.subr.msk.mxu0 %vm258_vm1, %v216_v6 }
  0x16   : > { %237 = vperm.xlu0 %618, %v223_v4   ;;  %575 = vmatpush3.msk.msra.mxu0 %vm258_vm1, %v216_v6 }
  0x17   : > { %227 = vperm.xlu1 %619, %v221_v5   ;;  %577 = vmatmul.mubr.msk.f32.vlgmr.msra.gmra.mxu0 %vm245_vm0, %v218_v7 }
  0x18   : > { %579 = vmatprep.mubr.msk.f32.mxu0 %vm245_vm0, %v219_v8 }
  0x1a   : > { %357 = vperm.xlu0 %618, %v353_v9  }
  0x1b   : > { %362 = vperm.xlu1 %619, %v354_v10   ;;  %580 = vmatmul.mubr.msk.f32.gmra.mxu0 %vm245_vm0, %v220_v11 }
  0x8d   : > { %v243_v13 = vpop.permute.xlu0 %242 }
  0x8e   : > { %v233_v14 = vpop.permute.xlu1 %232 }
  0x91   : > { %v238_v18 = vpop.permute.xlu0 %237 }
  0x92   : > { %v228_v20 = vpop.permute.xlu1 %227 }
  0x95   : > { %v358_v33 = vpop.permute.xlu0 %357 }
  0x96   : > { %v363_v30 = vpop.permute.xlu1 %362 }
  0xd7   : > { %v578_v15 = vpop.f32.mrf.mxu0 }
  0xd8   : > { %v334_v22 = vadd.f32 %v578_v15, %v233_v14 }
  0xd9   : > { %v328_v16 = vpop.f32.mrf.mxu0 }
  0xda   : > { %v329_v25 = vadd.f32 %v328_v16, %v228_v20  ;;  %v348_v27 = vmax.f32 %v334_v22, 0.0 }
  0xdb   : > { %v581_v17 = vpop.f32.mrf.mxu0 }
  0xdc   : > { %v344_v19 = vadd.f32 %v581_v17, %v243_v13  ;;  %v347_v28 = vmax.f32 %v329_v25, 0.0 }
  0xdd   : > { %v338_v21 = vpop.f32.mrf.mxu0 }
  0xde   : > { %v350_v23 = vmax.f32 %v344_v19, 0.0  ;;  %v339_v24 = vadd.f32 %v338_v21, %v238_v18 }
  0xe0   : > { %v349_v26 = vmax.f32 %v339_v24, 0.0  ;;  %582 = vmatprep.subr.mxu1 %v350_v23 }
  0xe1   : > { %583 = vmatpush3.msra.mxu1 %v350_v23 }
  0xe2   : > { %584 = vmatprep.subr.mxu1 %v349_v26 }
  0xe3   : > { %585 = vmatpush3.msra.mxu1 %v349_v26 }
  0xe4   : > { %586 = vmatprep.subr.mxu1 %v348_v27 }
  0xe5   : > { %587 = vmatpush3.msra.mxu1 %v348_v27 }
  0xe6   : > { %588 = vmatprep.subr.mxu1 %v347_v28 }
  0xe7   : > { %589 = vmatpush3.msra.mxu1 %v347_v28 }
  0xe8   : > { %591 = vmatmul.mubr.msk.f32.vlgmr.msra.gmra.mxu1 %vm365_vm2, %v352_v29 }
 0x1a8   : > { %v592_v31 = vpop.f32.mrf.mxu1 }
 0x1a9   : > { %v444_v32 = vadd.f32 %v592_v31, %v363_v30  ;;  %455 = sbr.rel (!%p700_p4) target bundleno = 438 (0x1b6), region = 44 }
 0x1aa   : > { %v438_v34 = vpop.f32.mrf.mxu1 }
 0x1ab   : > { %448 = vst [vmem:[%s211_s14 + $0x8] sm:$0xff] %v444_v32  ;;  %v439_v35 = vadd.f32 %v438_v34, %v358_v33 }
 0x1ad   : > { %447 = vst [vmem:[%s211_s14] sm:$0xff] %v439_v35 }
 0x1b2   : > { %v490_v37 = vld [vmem:[%s211_s14 + $0x8] sm:$0xff] }
 0x1b3   : > { %491 = vst [vmem:[%s457_s18 + $0x30] sm:$0xff] %v490_v37 }
 0x1b4   : > { %v488_v36 = vld [vmem:[%s211_s14] sm:$0xff] }
 0x1b5   : > { %489 = vst [vmem:[%s457_s18] sm:$0xff] %v488_v36 }
 0x1b6 PF: > { %p12_p8 = scmp.ge.s32.totalorder %s690_s22, 8   ;;  %s775_s18 = smov %s638_s19 }
 0x1b7   : > { %s776_s19 = smov %s698_s25  ;;  %s777_s20 = smov %s690_s22 }
 0x1b8   :  { %14 = sbr.rel (!%p12_p8) target bundleno = 2 (0x2), region = 108 }

</bundles_post_ra>
